<compile_context>
chip_gen: v7x
topology: tpu7x:2x2x1
jax: 0.10.0
libtpu: 0.0.40
codegen_flags: <defaults>
</compile_context>

<pallas_src>
import functools

import jax
import jax.numpy as jnp
import numpy as np
from jax.experimental import pallas as pl
from jax.experimental.pallas import tpu as pltpu


def _round_up(v, m):
    return (v + m - 1) // m * m


def _cdiv(a, b):
    return -(-a // b)


# ----------------------------------------------------------------------------
# Pallas kernel: TB samples per grid step; whole encoder = 8 dense MXU matmuls
# ----------------------------------------------------------------------------
def _voca_encoder_kernel(x_ref,       # VMEM (TB, H*A)  bf16 raw audio window
                         pid_ref,     # VMEM (TB, P)    bf16
                         w1a_ref, w1p_ref,            # conv1 split (audio/pid)
                         w2_ref, w3_ref, w4_ref,      # folded conv weights
                         wf1a_ref, wf1p_ref, wf2_ref, # fc weights
                         bias_ref,    # VMEM (6, maxw) f32 packed biases
                         out_ref,     # VMEM (TB, E)   f32
                         *, bias_widths):
    x = x_ref[...]
    pid = pid_ref[...]

    def bias(row):
        return bias_ref[row:row + 1, :bias_widths[row]]

    # conv1 (+ folded eval-mode BatchNorm), split exactly like fc1: pid channels
    # are constant along the window axis, so their taps collapse to (P, h1*32).
    a = (jnp.dot(x, w1a_ref[...], preferred_element_type=jnp.float32)
         + jnp.dot(pid, w1p_ref[...], preferred_element_type=jnp.float32)
         + bias(0))
    a = jnp.maximum(a, 0.0)                                   # (TB, (H/2)*32)

    def conv_relu(a, w_ref, row):
        y = jnp.dot(a.astype(w_ref.dtype), w_ref[...],
                    preferred_element_type=jnp.float32)
        return jnp.maximum(y + bias(row), 0.0)

    a = conv_relu(a, w2_ref, 1)     # (TB, (H/4)*32)
    a = conv_relu(a, w3_ref, 2)     # (TB, (H/8)*64)
    a = conv_relu(a, w4_ref, 3)     # (TB, 128)  lanes >= 64 are zero padding

    h = (jnp.dot(a.astype(wf1a_ref.dtype), wf1a_ref[...],
                 preferred_element_type=jnp.float32)
         + jnp.dot(pid, wf1p_ref[...], preferred_element_type=jnp.float32)
         + bias(4))
    h = jnp.tanh(h)                 # f32, EUP slot

    out = jnp.dot(h.astype(wf2_ref.dtype), wf2_ref[...],
                  preferred_element_type=jnp.float32) + bias(5)
    out_ref[...] = out.astype(out_ref.dtype)   # (TB, E): only useful bytes to HBM


# ----------------------------------------------------------------------------
# Weight folding: Conv2d((3,1), stride (2,1), pad (1,0)) -> dense tap tensor
# ----------------------------------------------------------------------------
def _fold_conv4d(w, b, h_in):
    """w: (Cout, Cin, 3, 1), b: (Cout,) -> taps (h_in, Cin, h_out, Cout), bias, h_out.
    Lane convention on both sides: lane = position*channels + channel."""
    cout, cin = int(w.shape[0]), int(w.shape[1])
    h_out = (h_in - 1) // 2 + 1
    wf = jnp.zeros((h_in, cin, h_out, cout), jnp.float32)
    for ho in range(h_out):
        for k in range(3):
            hi = 2 * ho + k - 1                   # pad = 1 on the window axis
            if 0 <= hi < h_in:
                wf = wf.at[hi, :, ho, :].set(w[:, :, k, 0].T.astype(jnp.float32))
    bf = jnp.tile(b.astype(jnp.float32), h_out)   # bf[ho*Cout + co] = b[co]
    return wf, bf, h_out


# ----------------------------------------------------------------------------
# JAX-side wrapper (parameter folding + pallas_call)
# ----------------------------------------------------------------------------
def _voca_encoder_forward_impl(x, pid, params, tile_b=1024):
    """x: (B, 1, audio_window, audio_features) f32 (NCHW).  pid: (B, base_persons)."""
    B, _, H, A = x.shape
    P = int(pid.shape[1])
    eps = 1e-5
    cdt = jnp.bfloat16                                        # MXU compute dtype

    # --- conv1 folded and split into audio / pid parts; eval-mode BN folded in.
    w1_4d, b1f, h1 = _fold_conv4d(params["conv1_w"], params["conv1_b"], H)
    scale = params["bn_gamma"][0] * jax.lax.rsqrt(params["bn_var"][0] + eps)
    shift = params["bn_beta"][0] - params["bn_mean"][0] * scale
    b1f = b1f + shift * jnp.sum(w1_4d[:, :A], axis=(0, 1)).reshape(-1)
    w1a = (scale * w1_4d[:, :A]).reshape(H * A, h1 * 32)      # (H*A, h1*32)
    w1p = jnp.sum(w1_4d[:, A:], axis=0).reshape(P, h1 * 32)   # (P,   h1*32)

    # --- conv2..conv4 folded to dense matrices.
    w2_4d, b2f, h2 = _fold_conv4d(params["conv2_w"], params["conv2_b"], h1)
    w2f = w2_4d.reshape(h1 * 32, h2 * 32)
    w3_4d, b3f, h3 = _fold_conv4d(params["conv3_w"], params["conv3_b"], h2)
    w3f = w3_4d.reshape(h2 * 32, h3 * 64)
    w4_4d, b4f, h4 = _fold_conv4d(params["conv4_w"], params["conv4_b"], h3)
    assert h4 == 1, "audio_window_size must collapse to 1 after 4 stride-2 convs"
    n4 = h4 * 64
    n4p = _round_up(n4, 128)                                  # 64 -> 128 lane-dense
    w4f = jnp.zeros((h3 * 64, n4p), jnp.float32).at[:, :n4].set(
        w4_4d.reshape(h3 * 64, n4))
    b4f = jnp.zeros((n4p,), jnp.float32).at[:n4].set(b4f)

    # --- FC head: split fc1 into conv-feature / pid parts; conv rows padded.
    wf1 = params["fc1_w"].T.astype(jnp.float32)               # (64+P, 128)
    F1 = int(wf1.shape[1])
    wf1a = jnp.zeros((n4p, F1), jnp.float32).at[:n4, :].set(wf1[:n4])
    wf1p = wf1[n4:]                                           # (P, 128)
    bf1 = params["fc1_b"].astype(jnp.float32)
    E = int(params["fc2_w"].shape[0])
    wf2 = params["fc2_w"].T.astype(jnp.float32)               # (128, E)
    bf2 = params["fc2_b"].astype(jnp.float32)

    # --- Pack all biases into one resident (6, maxw) f32 array.
    bias_rows = [b1f, b2f, b3f, b4f, bf1, bf2]
    widths = tuple(int(b.shape[0]) for b in bias_rows)
    maxw = _round_up(max(widths), 128)
    bias_mat = jnp.zeros((len(bias_rows), maxw), jnp.float32)
    for r, b in enumerate(bias_rows):
        bias_mat = bias_mat.at[r, :b.shape[0]].set(b)

    # --- bf16 weights / activations (f32 accumulate happens in the kernel).
    w1a, w1p, w2f, w3f, w4f, wf1a, wf1p, wf2 = (
        t.astype(cdt) for t in (w1a, w1p, w2f, w3f, w4f, wf1a, wf1p, wf2))
    xf = x[:, 0, :, :].reshape(B, H * A).astype(cdt)          # (B, H*A), no concat
    pid_c = pid.astype(cdt)                                   # (B, P)

    # --- Batch tiling: TB multiple of 16 (bf16 sublanes); even grid >= 2 so the
    #     "parallel" axis shards across both v7x TensorCores.  VMEM @ TB=1024 is
    #     a few MiB -- far under the 32 MiB default scoped limit everywhere.
    TB = max(16, int(min(tile_b, _round_up(max(_cdiv(B, 2), 1), 16))))
    num_tiles = _round_up(max(2, _cdiv(B, TB)), 2)
    TB = _round_up(_cdiv(B, num_tiles), 16)                   # minimize padding
    B_pad = num_tiles * TB
    if B_pad != B:
        xf = jnp.pad(xf, ((0, B_pad - B), (0, 0)))
        pid_c = jnp.pad(pid_c, ((0, B_pad - B), (0, 0)))

    def resident(arr):   # weights/biases: constant index_map -> DMA'd once
        return pl.BlockSpec(arr.shape, lambda i: (0, 0))

    # Advisory cost estimate so XLA schedules the surrounding pad/slice well.
    mm = [(H * A, h1 * 32), (P, h1 * 32), (h1 * 32, h2 * 32), (h2 * 32, h3 * 64),
          (h3 * 64, n4p), (n4p, F1), (P, F1), (F1, E)]
    weight_bytes = sum(k * n for k, n in mm) * 2 + bias_mat.size * 4
    cost = pl.CostEstimate(
        flops=int(2 * B_pad * sum(k * n for k, n in mm)),
        transcendentals=int(B_pad * F1),
        bytes_accessed=int(B_pad * ((H * A + P) * 2 + E * 4) + weight_bytes))

    out = pl.pallas_call(
        functools.partial(_voca_encoder_kernel, bias_widths=widths),
        out_shape=jax.ShapeDtypeStruct((B_pad, E), jnp.float32),
        grid=(num_tiles,),
        in_specs=[
            pl.BlockSpec((TB, H * A), lambda i: (i, 0)),      # audio window
            pl.BlockSpec((TB, P), lambda i: (i, 0)),          # pid
            resident(w1a), resident(w1p),
            resident(w2f), resident(w3f), resident(w4f),
            resident(wf1a), resident(wf1p), resident(wf2),
            resident(bias_mat),
        ],
        out_specs=pl.BlockSpec((TB, E), lambda i: (i, 0)),    # exact useful bytes
        compiler_params=pltpu.CompilerParams(
            dimension_semantics=("parallel",)),               # v7x: 2 TCs
        cost_estimate=cost,
    )(xf, pid_c, w1a, w1p, w2f, w3f, w4f, wf1a, wf1p, wf2, bias_mat)

    return out[:B]


voca_encoder_forward = jax.jit(_voca_encoder_forward_impl,
                               static_argnames=("tile_b",))


# ----------------------------------------------------------------------------
# Pure-JAX reference (mirrors the PyTorch forward) for a correctness check
# ----------------------------------------------------------------------------
def voca_encoder_reference(x, pid, params):
    eps = 1e-5
    xb = (x - params["bn_mean"].reshape(1, 1, 1, 1)) \
         / jnp.sqrt(params["bn_var"].reshape(1, 1, 1, 1) + eps) \
         * params["bn_gamma"].reshape(1, 1, 1, 1) \
         + params["bn_beta"].reshape(1, 1, 1, 1)
    xt = jnp.transpose(xb, (0, 3, 2, 1))                      # (B, A, H, 1)
    B, _, H, _ = xt.shape
    y = jnp.broadcast_to(pid[:, :, None, None], (B, pid.shape[1], H, 1))
    a = jnp.concatenate([xt, y], axis=1)
    for i in range(1, 5):
        w = params[f"conv{i}_w"]; b = params[f"conv{i}_b"]
        a = jax.lax.conv_general_dilated(
            a, w, window_strides=(2, 1), padding=((1, 1), (0, 0)),
            dimension_numbers=("NCHW", "OIHW", "NCHW"))
        a = jnp.maximum(a + b.reshape(1, -1, 1, 1), 0.0)
    flat = a.reshape(B, -1)
    feat = jnp.concatenate([flat, pid], axis=1)
    h1 = jnp.tanh(feat @ params["fc1_w"].T + params["fc1_b"])
    return h1 @ params["fc2_w"].T + params["fc2_b"]


# ----------------------------------------------------------------------------
# Main
# ----------------------------------------------------------------------------
if __name__ == "__main__":
    # Small, module-consistent shapes.
    B = 2                      # batch
    A = 8                      # audio_features
    H = 16                     # audio_window_size (collapses to 1 after 4 convs)
    P = 4                      # base_persons
    E = 16                     # encoder_features

    key = jax.random.PRNGKey(0)
    ks = jax.random.split(key, 20)

    def nrm(k, shape, s=0.1):
        return s * jax.random.normal(k, shape, dtype=jnp.float32)

    params = {
        "bn_gamma": 1.0 + 0.1 * jax.random.normal(ks[0], (1,), dtype=jnp.float32),
        "bn_beta": 0.1 * jax.random.normal(ks[1], (1,), dtype=jnp.float32),
        "bn_mean": 0.1 * jax.random.normal(ks[2], (1,), dtype=jnp.float32),
        "bn_var": 1.0 + 0.1 * jnp.abs(jax.random.normal(ks[3], (1,), dtype=jnp.float32)),
        "conv1_w": nrm(ks[4], (32, A + P, 3, 1)), "conv1_b": nrm(ks[5], (32,)),
        "conv2_w": nrm(ks[6], (32, 32, 3, 1)),    "conv2_b": nrm(ks[7], (32,)),
        "conv3_w": nrm(ks[8], (64, 32, 3, 1)),    "conv3_b": nrm(ks[9], (64,)),
        "conv4_w": nrm(ks[10], (64, 64, 3, 1)),   "conv4_b": nrm(ks[11], (64,)),
        "fc1_w": nrm(ks[12], (128, 64 + P)),      "fc1_b": nrm(ks[13], (128,)),
        "fc2_w": nrm(ks[14], (E, 128)),           "fc2_b": nrm(ks[15], (E,)),
    }

    x = jax.random.normal(ks[16], (B, 1, H, A), dtype=jnp.float32)
    pid = jax.nn.one_hot(jnp.array([0, 2]), P, dtype=jnp.float32)     # (B, P)

    out = voca_encoder_forward(x, pid, params)
    out = jax.block_until_ready(out)

    ref = jax.block_until_ready(voca_encoder_reference(x, pid, params))
    # Tolerance reflects bf16 inputs/weights (f32 accumulation, f32 bias/tanh).
    np.testing.assert_allclose(np.asarray(out), np.asarray(ref), rtol=2e-2, atol=2e-2)

    print("KERNEL_OK")
</pallas_src>

<mosaic_0001>
module attributes {stable_mosaic.version = 11 : i64} {
  func.func @_voca_encoder_kernel(%arg0: i32, %arg1: memref<16x128xbf16, #tpu.memory_space<vmem>>, %arg2: memref<16x4xbf16, #tpu.memory_space<vmem>>, %arg3: memref<128x256xbf16, #tpu.memory_space<vmem>>, %arg4: memref<4x256xbf16, #tpu.memory_space<vmem>>, %arg5: memref<256x128xbf16, #tpu.memory_space<vmem>>, %arg6: memref<128x128xbf16, #tpu.memory_space<vmem>>, %arg7: memref<128x128xbf16, #tpu.memory_space<vmem>>, %arg8: memref<128x128xbf16, #tpu.memory_space<vmem>>, %arg9: memref<4x128xbf16, #tpu.memory_space<vmem>>, %arg10: memref<128x16xbf16, #tpu.memory_space<vmem>>, %arg11: memref<6x256xf32, #tpu.memory_space<vmem>>, %arg12: memref<16x16xf32, #tpu.memory_space<vmem>>) attributes {dimension_semantics = [#tpu.dimension_semantics<parallel>], iteration_bounds = array<i64: 2>, scalar_prefetch = 0 : i64, scratch_operands = 0 : i64, tpu.core_type = #tpu.core_type<tc>, window_params = [{transform_indices = @transform_0, window_bounds = array<i64: 16, 128>}, {transform_indices = @transform_1, window_bounds = array<i64: 16, 4>}, {pipeline_mode = #tpu.pipeline_mode<synchronous>, transform_indices = @transform_2, window_bounds = array<i64: 128, 256>}, {pipeline_mode = #tpu.pipeline_mode<synchronous>, transform_indices = @transform_3, window_bounds = array<i64: 4, 256>}, {pipeline_mode = #tpu.pipeline_mode<synchronous>, transform_indices = @transform_4, window_bounds = array<i64: 256, 128>}, {pipeline_mode = #tpu.pipeline_mode<synchronous>, transform_indices = @transform_5, window_bounds = array<i64: 128, 128>}, {pipeline_mode = #tpu.pipeline_mode<synchronous>, transform_indices = @transform_6, window_bounds = array<i64: 128, 128>}, {pipeline_mode = #tpu.pipeline_mode<synchronous>, transform_indices = @transform_7, window_bounds = array<i64: 128, 128>}, {pipeline_mode = #tpu.pipeline_mode<synchronous>, transform_indices = @transform_8, window_bounds = array<i64: 4, 128>}, {pipeline_mode = #tpu.pipeline_mode<synchronous>, transform_indices = @transform_9, window_bounds = array<i64: 128, 16>}, {pipeline_mode = #tpu.pipeline_mode<synchronous>, transform_indices = @transform_10, window_bounds = array<i64: 6, 256>}, {transform_indices = @transform_11, window_bounds = array<i64: 16, 16>}]} {
    %c0 = arith.constant 0 : index
    %c0_0 = arith.constant 0 : index
    %0 = vector.load %arg1[%c0, %c0_0] : memref<16x128xbf16, #tpu.memory_space<vmem>>, vector<16x128xbf16>
    %c0_1 = arith.constant 0 : index
    %c0_2 = arith.constant 0 : index
    %1 = vector.load %arg2[%c0_1, %c0_2] : memref<16x4xbf16, #tpu.memory_space<vmem>>, vector<16x4xbf16>
    %c0_3 = arith.constant 0 : index
    %c0_4 = arith.constant 0 : index
    %2 = vector.load %arg3[%c0_3, %c0_4] : memref<128x256xbf16, #tpu.memory_space<vmem>>, vector<128x256xbf16>
    %cst = arith.constant dense<0.000000e+00> : vector<16x256xf32>
    %3 = tpu.matmul %0, %2, %cst {dimension_numbers = #tpu.dot_dimension_numbers<[1], [0], [0], [1], [0, 0, 1, 1], [], []>} : vector<16x128xbf16>, vector<128x256xbf16>, vector<16x256xf32> -> vector<16x256xf32>
    %c0_5 = arith.constant 0 : index
    %c0_6 = arith.constant 0 : index
    %4 = vector.load %arg4[%c0_5, %c0_6] : memref<4x256xbf16, #tpu.memory_space<vmem>>, vector<4x256xbf16>
    %cst_7 = arith.constant dense<0.000000e+00> : vector<16x256xf32>
    %5 = tpu.matmul %1, %4, %cst_7 {dimension_numbers = #tpu.dot_dimension_numbers<[1], [0], [0], [1], [0, 0, 1, 1], [], []>} : vector<16x4xbf16>, vector<4x256xbf16>, vector<16x256xf32> -> vector<16x256xf32>
    %6 = arith.addf %3, %5 : vector<16x256xf32>
    %c0_8 = arith.constant 0 : index
    %c0_9 = arith.constant 0 : index
    %7 = vector.load %arg11[%c0_8, %c0_9] : memref<6x256xf32, #tpu.memory_space<vmem>>, vector<1x256xf32>
    %8 = vector.broadcast %7 : vector<1x256xf32> to vector<16x256xf32>
    %9 = arith.addf %6, %8 : vector<16x256xf32>
    %cst_10 = arith.constant 0.000000e+00 : f32
    %10 = vector.broadcast %cst_10 : f32 to vector<16x256xf32>
    %11 = arith.maximumf %9, %10 : vector<16x256xf32>
    %12 = arith.truncf %11 : vector<16x256xf32> to vector<16x256xbf16>
    %c0_11 = arith.constant 0 : index
    %c0_12 = arith.constant 0 : index
    %13 = vector.load %arg5[%c0_11, %c0_12] : memref<256x128xbf16, #tpu.memory_space<vmem>>, vector<256x128xbf16>
    %cst_13 = arith.constant dense<0.000000e+00> : vector<16x128xf32>
    %14 = tpu.matmul %12, %13, %cst_13 {dimension_numbers = #tpu.dot_dimension_numbers<[1], [0], [0], [1], [0, 0, 1, 1], [], []>} : vector<16x256xbf16>, vector<256x128xbf16>, vector<16x128xf32> -> vector<16x128xf32>
    %c1 = arith.constant 1 : index
    %c0_14 = arith.constant 0 : index
    %15 = vector.load %arg11[%c1, %c0_14] : memref<6x256xf32, #tpu.memory_space<vmem>>, vector<1x128xf32>
    %16 = vector.broadcast %15 : vector<1x128xf32> to vector<16x128xf32>
    %17 = arith.addf %14, %16 : vector<16x128xf32>
    %cst_15 = arith.constant 0.000000e+00 : f32
    %18 = vector.broadcast %cst_15 : f32 to vector<16x128xf32>
    %19 = arith.maximumf %17, %18 : vector<16x128xf32>
    %20 = arith.truncf %19 : vector<16x128xf32> to vector<16x128xbf16>
    %c0_16 = arith.constant 0 : index
    %c0_17 = arith.constant 0 : index
    %21 = vector.load %arg6[%c0_16, %c0_17] : memref<128x128xbf16, #tpu.memory_space<vmem>>, vector<128x128xbf16>
    %cst_18 = arith.constant dense<0.000000e+00> : vector<16x128xf32>
    %22 = tpu.matmul %20, %21, %cst_18 {dimension_numbers = #tpu.dot_dimension_numbers<[1], [0], [0], [1], [0, 0, 1, 1], [], []>} : vector<16x128xbf16>, vector<128x128xbf16>, vector<16x128xf32> -> vector<16x128xf32>
    %c2 = arith.constant 2 : index
    %c0_19 = arith.constant 0 : index
    %23 = vector.load %arg11[%c2, %c0_19] : memref<6x256xf32, #tpu.memory_space<vmem>>, vector<1x128xf32>
    %24 = vector.broadcast %23 : vector<1x128xf32> to vector<16x128xf32>
    %25 = arith.addf %22, %24 : vector<16x128xf32>
    %cst_20 = arith.constant 0.000000e+00 : f32
    %26 = vector.broadcast %cst_20 : f32 to vector<16x128xf32>
    %27 = arith.maximumf %25, %26 : vector<16x128xf32>
    %28 = arith.truncf %27 : vector<16x128xf32> to vector<16x128xbf16>
    %c0_21 = arith.constant 0 : index
    %c0_22 = arith.constant 0 : index
    %29 = vector.load %arg7[%c0_21, %c0_22] : memref<128x128xbf16, #tpu.memory_space<vmem>>, vector<128x128xbf16>
    %cst_23 = arith.constant dense<0.000000e+00> : vector<16x128xf32>
    %30 = tpu.matmul %28, %29, %cst_23 {dimension_numbers = #tpu.dot_dimension_numbers<[1], [0], [0], [1], [0, 0, 1, 1], [], []>} : vector<16x128xbf16>, vector<128x128xbf16>, vector<16x128xf32> -> vector<16x128xf32>
    %c3 = arith.constant 3 : index
    %c0_24 = arith.constant 0 : index
    %31 = vector.load %arg11[%c3, %c0_24] : memref<6x256xf32, #tpu.memory_space<vmem>>, vector<1x128xf32>
    %32 = vector.broadcast %31 : vector<1x128xf32> to vector<16x128xf32>
    %33 = arith.addf %30, %32 : vector<16x128xf32>
    %cst_25 = arith.constant 0.000000e+00 : f32
    %34 = vector.broadcast %cst_25 : f32 to vector<16x128xf32>
    %35 = arith.maximumf %33, %34 : vector<16x128xf32>
    %36 = arith.truncf %35 : vector<16x128xf32> to vector<16x128xbf16>
    %c0_26 = arith.constant 0 : index
    %c0_27 = arith.constant 0 : index
    %37 = vector.load %arg8[%c0_26, %c0_27] : memref<128x128xbf16, #tpu.memory_space<vmem>>, vector<128x128xbf16>
    %cst_28 = arith.constant dense<0.000000e+00> : vector<16x128xf32>
    %38 = tpu.matmul %36, %37, %cst_28 {dimension_numbers = #tpu.dot_dimension_numbers<[1], [0], [0], [1], [0, 0, 1, 1], [], []>} : vector<16x128xbf16>, vector<128x128xbf16>, vector<16x128xf32> -> vector<16x128xf32>
    %c0_29 = arith.constant 0 : index
    %c0_30 = arith.constant 0 : index
    %39 = vector.load %arg9[%c0_29, %c0_30] : memref<4x128xbf16, #tpu.memory_space<vmem>>, vector<4x128xbf16>
    %cst_31 = arith.constant dense<0.000000e+00> : vector<16x128xf32>
    %40 = tpu.matmul %1, %39, %cst_31 {dimension_numbers = #tpu.dot_dimension_numbers<[1], [0], [0], [1], [0, 0, 1, 1], [], []>} : vector<16x4xbf16>, vector<4x128xbf16>, vector<16x128xf32> -> vector<16x128xf32>
    %41 = arith.addf %38, %40 : vector<16x128xf32>
    %c4 = arith.constant 4 : index
    %c0_32 = arith.constant 0 : index
    %42 = vector.load %arg11[%c4, %c0_32] : memref<6x256xf32, #tpu.memory_space<vmem>>, vector<1x128xf32>
    %43 = vector.broadcast %42 : vector<1x128xf32> to vector<16x128xf32>
    %44 = arith.addf %41, %43 : vector<16x128xf32>
    %45 = math.tanh %44 : vector<16x128xf32>
    %46 = arith.truncf %45 : vector<16x128xf32> to vector<16x128xbf16>
    %c0_33 = arith.constant 0 : index
    %c0_34 = arith.constant 0 : index
    %47 = vector.load %arg10[%c0_33, %c0_34] : memref<128x16xbf16, #tpu.memory_space<vmem>>, vector<128x16xbf16>
    %cst_35 = arith.constant dense<0.000000e+00> : vector<16x16xf32>
    %48 = tpu.matmul %46, %47, %cst_35 {dimension_numbers = #tpu.dot_dimension_numbers<[1], [0], [0], [1], [0, 0, 1, 1], [], []>} : vector<16x128xbf16>, vector<128x16xbf16>, vector<16x16xf32> -> vector<16x16xf32>
    %c5 = arith.constant 5 : index
    %c0_36 = arith.constant 0 : index
    %49 = vector.load %arg11[%c5, %c0_36] : memref<6x256xf32, #tpu.memory_space<vmem>>, vector<1x16xf32>
    %50 = vector.broadcast %49 : vector<1x16xf32> to vector<16x16xf32>
    %51 = arith.addf %48, %50 : vector<16x16xf32>
    %c0_37 = arith.constant 0 : index
    %c0_38 = arith.constant 0 : index
    %52 = vector.load %arg12[%c0_37, %c0_38] : memref<16x16xf32, #tpu.memory_space<vmem>>, vector<16x16xf32>
    tpu.vector_store %arg12[%c0_37, %c0_38], %51 {strides = array<i32>} : memref<16x16xf32, #tpu.memory_space<vmem>>, vector<16x16xf32>,
    return
  }
  func.func @transform_0(%arg0: i32) -> (i32, i32) {
    %c0_i32 = arith.constant 0 : i32
    %c0_i32_0 = arith.constant 0 : i32
    return %arg0, %c0_i32 : i32, i32
  }
  func.func @transform_1(%arg0: i32) -> (i32, i32) {
    %c0_i32 = arith.constant 0 : i32
    %c0_i32_0 = arith.constant 0 : i32
    return %arg0, %c0_i32 : i32, i32
  }
  func.func @transform_2(%arg0: i32) -> (i32, i32) {
    %c0_i32 = arith.constant 0 : i32
    %c0_i32_0 = arith.constant 0 : i32
    %c0_i32_1 = arith.constant 0 : i32
    return %c0_i32, %c0_i32_0 : i32, i32
  }
  func.func @transform_3(%arg0: i32) -> (i32, i32) {
    %c0_i32 = arith.constant 0 : i32
    %c0_i32_0 = arith.constant 0 : i32
    %c0_i32_1 = arith.constant 0 : i32
    return %c0_i32, %c0_i32_0 : i32, i32
  }
  func.func @transform_4(%arg0: i32) -> (i32, i32) {
    %c0_i32 = arith.constant 0 : i32
    %c0_i32_0 = arith.constant 0 : i32
    %c0_i32_1 = arith.constant 0 : i32
    return %c0_i32, %c0_i32_0 : i32, i32
  }
  func.func @transform_5(%arg0: i32) -> (i32, i32) {
    %c0_i32 = arith.constant 0 : i32
    %c0_i32_0 = arith.constant 0 : i32
    %c0_i32_1 = arith.constant 0 : i32
    return %c0_i32, %c0_i32_0 : i32, i32
  }
  func.func @transform_6(%arg0: i32) -> (i32, i32) {
    %c0_i32 = arith.constant 0 : i32
    %c0_i32_0 = arith.constant 0 : i32
    %c0_i32_1 = arith.constant 0 : i32
    return %c0_i32, %c0_i32_0 : i32, i32
  }
  func.func @transform_7(%arg0: i32) -> (i32, i32) {
    %c0_i32 = arith.constant 0 : i32
    %c0_i32_0 = arith.constant 0 : i32
    %c0_i32_1 = arith.constant 0 : i32
    return %c0_i32, %c0_i32_0 : i32, i32
  }
  func.func @transform_8(%arg0: i32) -> (i32, i32) {
    %c0_i32 = arith.constant 0 : i32
    %c0_i32_0 = arith.constant 0 : i32
    %c0_i32_1 = arith.constant 0 : i32
    return %c0_i32, %c0_i32_0 : i32, i32
  }
  func.func @transform_9(%arg0: i32) -> (i32, i32) {
    %c0_i32 = arith.constant 0 : i32
    %c0_i32_0 = arith.constant 0 : i32
    %c0_i32_1 = arith.constant 0 : i32
    return %c0_i32, %c0_i32_0 : i32, i32
  }
  func.func @transform_10(%arg0: i32) -> (i32, i32) {
    %c0_i32 = arith.constant 0 : i32
    %c0_i32_0 = arith.constant 0 : i32
    %c0_i32_1 = arith.constant 0 : i32
    return %c0_i32, %c0_i32_0 : i32, i32
  }
  func.func @transform_11(%arg0: i32) -> (i32, i32) {
    %c0_i32 = arith.constant 0 : i32
    %c0_i32_0 = arith.constant 0 : i32
    return %arg0, %c0_i32 : i32, i32
  }
}

</mosaic_0001>

<bundles_post_ra>
// kernel: tile.23
= control target key start
LH: loop header
LB: loop body
LE: loop exit
PB: predicated region body
PF: predicated region fallthrough
CT: control target
= control target key end

     0   :  { %s22_s0 = inlined_call_operand.vmem [shape: f32[32], index: 0, kind: input, shape index: {}]   ;;  %s23_s1 = inlined_call_operand.vmem [shape: f32[4,32], index: 1, kind: output, shape index: {}]  }
   0x1   :  { %v4_v0 = vld [vmem:[%s22_s0] ss:$0 sm:$0xff] }
   0x2   :  { %5 = vst [vmem:[%s23_s1] sm:$0xf] %v4_v0 }

// kernel: tile.28
= control target key start
LH: loop header
LB: loop body
LE: loop exit
PB: predicated region body
PF: predicated region fallthrough
CT: control target
= control target key end

     0   :  { %s22_s0 = inlined_call_operand.vmem [shape: f32[64], index: 0, kind: input, shape index: {}]   ;;  %s23_s1 = inlined_call_operand.vmem [shape: f32[2,64], index: 1, kind: output, shape index: {}]  }
   0x1   :  { %v4_v0 = vld [vmem:[%s22_s0] ss:$0 sm:$0xff] }
   0x2   :  { %5 = vst [vmem:[%s23_s1] sm:$0x3] %v4_v0 }

// kernel: _voca_encoder_forward_impl.1
= control target key start
LH: loop header
LB: loop body
LE: loop exit
PB: predicated region body
PF: predicated region fallthrough
CT: control target
= control target key end

     0   :  { %s1770_s17 = smov 0   ;;  %s2065_s0 = inlined_call_operand.vmem [shape: bf16[32,128], index: 0, kind: input, shape index: {}]   ;;  %s2066_s1 = inlined_call_operand.vmem [shape: bf16[32,4], index: 1, kind: input, shape index: {}]   ;;  %s2067_s2 = inlined_call_operand.vmem [shape: bf16[128,256], index: 2, kind: input, shape index: {}]   ;;  %s2068_s3 = inlined_call_operand.vmem [shape: bf16[4,256], index: 3, kind: input, shape index: {}]   ;;  %s2069_s4 = inlined_call_operand.vmem [shape: bf16[256,128], index: 4, kind: input, shape index: {}]   ;;  %s2070_s5 = inlined_call_operand.vmem [shape: bf16[128,128], index: 5, kind: input, shape index: {}]   ;;  %s2071_s6 = inlined_call_operand.vmem [shape: bf16[128,128], index: 6, kind: input, shape index: {}]   ;;  %s2072_s7 = inlined_call_operand.vmem [shape: bf16[128,128], index: 7, kind: input, shape index: {}]   ;;  %s2073_s8 = inlined_call_operand.vmem [shape: bf16[4,128], index: 8, kind: input, shape index: {}]   ;;  %s2074_s9 = inlined_call_operand.vmem [shape: bf16[128,16], index: 9, kind: input, shape index: {}]   ;;  %s2075_s10 = inlined_call_operand.vmem [shape: f32[6,256], index: 10, kind: input, shape index: {}]   ;;  %s2076_s11 = inlined_call_operand.vmem [shape: f32[32,16], index: 11, kind: output, shape index: {}]  }
   0x1 LB: > { %s1377_s18 = sadd.s32 4294967295, %s1705_s17   ;;  %p1381_p0 = scmp.ge.s32.totalorder %s1705_s17, 1  ;;  %s1705_s17 = sphi %s1770_s17, %s21_s17  }
   0x2   : > { %p349_p1 = scmp.lt.s32.totalorder %s1705_s17, 3 }
   0x4   : > { %p350_p2 = pnand %p1381_p0, %p349_p1 }
   0x5   : > { %v1389_v0 = vld.sshfl [vmem:[%s2068_s3] sm:$0x33 pattern:$0x76325410] (!%p350_p2)  ;;  %vm452_vm0 = vcmask (!%p350_p2), 1041408   ;;  %v1707_v3 = vmov (!%p350_p2), 0   ;;  %v633_v39 = vlaneseq (!%p350_p2) }
   0x6   : > { %353 = sbr.rel (%p350_p2) target bundleno = 1382 (0x566), region = 64  ;;  %v447_v1 = vcombine.high (!%p350_p2), %v1389_v0, %v1389_v0  ;;  %v454_v2 = vsel (!%p350_p2), %vm452_vm0, %v1389_v0, 0  ;;  %491 = vmatprep.mubr.bf16.mxu0 (!%p350_p2), %v1707_v3  ;;  %s1382_s21 = sshll.u32 (!%p350_p2), %s1377_s18, 1  ;;  %v1623_v4 = vld [vmem:[%s2067_s2 + $0x4] ss:$8 sps:$4 sm:$0xff] (!%p350_p2)   ;;  %vm448_vm1 = vcmask (!%p350_p2), 31744  }
   0x7   : > { %p395_p3 = scmp.lt.s32.totalorder (!%p350_p2), %s1382_s21, 3  ;;  %v1621_v5 = vld [vmem:[%s2067_s2] ss:$8 sps:$4 sm:$0xff] (!%p350_p2)   ;;  %v1627_v6 = vld [vmem:[%s2067_s2 + $0x14] ss:$8 sps:$4 sm:$0xff] (!%p350_p2)   ;;  %v1708_v38 = vmov (!%p350_p2), 0.0  }
   0x8   : > { %1390 = vmatprep.subr.msk.bf16.mxu0 (!%p350_p2), %vm452_vm0, %v447_v1  ;;  %v1625_v8 = vld [vmem:[%s2067_s2 + $0x10] ss:$8 sps:$4 sm:$0xff] (!%p350_p2)   ;;  %v1630_v9 = vld [vmem:[%s2067_s2 + $0x24] ss:$8 sps:$4 sm:$0xff] (!%p350_p2)   ;;  %v1628_v10 = vld [vmem:[%s2067_s2 + $0x20] ss:$8 sps:$4 sm:$0xff] (!%p350_p2)  }
   0x9   : > { %460 = vmatpush1.bf16.msra.mxu0 (!%p350_p2), %v454_v2  ;;  %v1633_v11 = vld [vmem:[%s2067_s2 + $0x34] ss:$8 sps:$4 sm:$0xff] (!%p350_p2)   ;;  %v1647_v12 = vld [vmem:[%s2069_s4 + $0x40] sm:$0xff] (!%p350_p2)   ;;  %v1649_v14 = vld [vmem:[%s2069_s4 + $0x48] sm:$0xff] (!%p350_p2)   ;;  %v634_v40 = vshrl.u32 (!%p350_p2), %v633_v39, 7  ;;  %vm1709_vm2 = vmmov (!%p350_p2), 0  }
   0xa   : > { %588 = vmatprep.subr.bf16.mxu0 (!%p350_p2), %v1623_v4  ;;  %v1648_v13 = vld [vmem:[%s2069_s4] sm:$0xff] (!%p350_p2)   ;;  %1460 = vmatprep.subr.bf16.mxu1 (!%p350_p2), %v1647_v12  ;;  %v1650_v15 = vld [vmem:[%s2069_s4 + $0x8] sm:$0xff] (!%p350_p2)   ;;  %v1651_v16 = vld [vmem:[%s2069_s4 + $0x50] sm:$0xff] (!%p350_p2)   ;;  %vm1306_vm3 = vcmask (!%p350_p2), 130048  }
   0xb   : > { %1461 = vmatpush3.bf16.msra.mxu1 (!%p350_p2), %v1648_v13  ;;  %v1631_v17 = vld [vmem:[%s2067_s2 + $0x30] ss:$8 sps:$4 sm:$0xff] (!%p350_p2)   ;;  %v1636_v18 = vld [vmem:[%s2067_s2 + $0x44] ss:$8 sps:$4 sm:$0xff] (!%p350_p2)   ;;  %v1634_v19 = vld [vmem:[%s2067_s2 + $0x40] ss:$8 sps:$4 sm:$0xff] (!%p350_p2)  }
   0xc   : > { %1462 = vmatprep.subr.bf16.mxu1 (!%p350_p2), %v1649_v14  ;;  %v1652_v20 = vld [vmem:[%s2069_s4 + $0x10] sm:$0xff] (!%p350_p2)   ;;  %v1653_v22 = vld [vmem:[%s2069_s4 + $0x58] sm:$0xff] (!%p350_p2)   ;;  %v1655_v24 = vld [vmem:[%s2069_s4 + $0x60] sm:$0xff] (!%p350_p2)   ;;  %v635_v41 = vsub.s32 (!%p350_p2), 0, %v634_v40  ;;  %v639_v43 = vsub.s32 (!%p350_p2), 1, %v634_v40 }
   0xd   : > { %s2078_s21 = smov (!%p395_p3, %s1382_s21), 3  ;;  %v1639_v21 = vld [vmem:[%s2067_s2 + $0x54] ss:$8 sps:$4 sm:$0xff]   ;;  %v1637_v25 = vld [vmem:[%s2067_s2 + $0x50] ss:$8 sps:$4 sm:$0xff]   ;;  %v1656_v27 = vld [vmem:[%s2069_s4 + $0x20] sm:$0xff]  }
   0xe   : > { %s1383_s24 = sshll.u32 %s2078_s21, 2  ;;  %v1654_v23 = vld [vmem:[%s2069_s4 + $0x18] sm:$0xff]   ;;  %v1642_v26 = vld [vmem:[%s2067_s2 + $0x64] ss:$8 sps:$4 sm:$0xff]   ;;  %v1640_v29 = vld [vmem:[%s2067_s2 + $0x60] ss:$8 sps:$4 sm:$0xff]  }
   0xf   : > { %s404_s29 = scalar_lea.vmem %s2066_s1, %s1383_s24  ;;  %s1808_s18 = scalar_lea.vmem %s2065_s0, %s1383_s24  ;;  %1463 = vmatpush3.bf16.msra.mxu1 %v1650_v15  ;;  %v1657_v28 = vld [vmem:[%s2069_s4 + $0x68] sm:$0xff]   ;;  %v1645_v30 = vld [vmem:[%s2067_s2 + $0x74] ss:$8 sps:$4 sm:$0xff]   ;;  %v1643_v31 = vld [vmem:[%s2067_s2 + $0x70] ss:$8 sps:$4 sm:$0xff]  }
  0x10   : > { %v1798_v7 = vld [vmem:[%s404_s29] sm:$0xff]   ;;  %1464 = vmatprep.subr.bf16.mxu1 %v1651_v16  ;;  %v1658_v33 = vld [vmem:[%s2069_s4 + $0x28] sm:$0xff]   ;;  %v1659_v34 = vld [vmem:[%s2069_s4 + $0x70] sm:$0xff]   ;;  %s1387_s16 = sshll.u32 %s2078_s21, 3 }
  0x11   : > { %1391 = vmatmul.mubr.msk.bf16.vlgmr.msra.gmra.mrb[0].mxu0 %vm448_vm1, %v1798_v7  ;;  %v1646_v32 = vld [vmem:[%s1808_s18] sm:$0xff]   ;;  %v1660_v35 = vld [vmem:[%s2069_s4 + $0x30] sm:$0xff]   ;;  %v1661_v36 = vld [vmem:[%s2069_s4 + $0x78] sm:$0xff]   ;;  %s410_s25 = scalar_lea.vmem %s2076_s11, %s1387_s16 }
  0x12   : > { %589 = vmatpush1.bf16.msra.mxu0 %v1621_v5  ;;  %620 = vmatprep.mubr.bf16.mxu0 %v1707_v3  ;;  %v1662_v37 = vld [vmem:[%s2069_s4 + $0x38] sm:$0xff]   ;;  %v631_v42 = vld [vmem:[%s2075_s10] ss:$8 sm:$0x3]  ;;  %v1665_v62 = vld [vmem:[%s2070_s5 + $0x10] sm:$0xff]  }
  0x13   : > { %590 = vmatprep.subr.bf16.mxu0 %v1627_v6  ;;  %1465 = vmatpush3.bf16.msra.mxu1 %v1652_v20  ;;  %v636_v44 = vrot.slane %v631_v42, %v635_v41  ;;  %v640_v45 = vrot.slane %v631_v42, %v639_v43  ;;  %v1663_v60 = vld [vmem:[%s2070_s5] sm:$0xff]   ;;  %v1664_v61 = vld [vmem:[%s2070_s5 + $0x8] sm:$0xff]   ;;  %v1666_v63 = vld [vmem:[%s2070_s5 + $0x18] sm:$0xff]  }
  0x14   : > { %1466 = vmatprep.subr.bf16.mxu1 %v1653_v22  ;;  %v1667_v0 = vld [vmem:[%s2070_s5 + $0x20] sm:$0xff]   ;;  %v1668_v1 = vld [vmem:[%s2070_s5 + $0x28] sm:$0xff]   ;;  %v1669_v2 = vld [vmem:[%s2070_s5 + $0x30] sm:$0xff]  }
  0x15   : > { %v1670_v3 = vld [vmem:[%s2070_s5 + $0x38] sm:$0xff]   ;;  %v1671_v4 = vld [vmem:[%s2071_s6] sm:$0xff]   ;;  %v1672_v5 = vld [vmem:[%s2071_s6 + $0x8] sm:$0xff]  }
  0x16   : > { %591 = vmatpush1.bf16.msra.mxu0 %v1625_v8  ;;  %v1673_v6 = vld [vmem:[%s2071_s6 + $0x10] sm:$0xff]   ;;  %v1674_v8 = vld [vmem:[%s2071_s6 + $0x18] sm:$0xff]   ;;  %v685_v12 = vld [vmem:[%s2075_s10 + $0x1] ss:$0 sm:$0xff] }
  0x17   : > { %592 = vmatprep.subr.bf16.mxu0 %v1630_v9  ;;  %1467 = vmatpush3.bf16.msra.mxu1 %v1654_v23  ;;  %v1675_v9 = vld [vmem:[%s2071_s6 + $0x20] sm:$0xff]   ;;  %v1677_v23 = vld [vmem:[%s2071_s6 + $0x30] sm:$0xff]   ;;  %v1682_v39 = vld [vmem:[%s2072_s7 + $0x18] sm:$0xff]  }
  0x18   : > { %1468 = vmatprep.subr.bf16.mxu1 %v1655_v24  ;;  %v1678_v24 = vld [vmem:[%s2071_s6 + $0x38] sm:$0xff]   ;;  %v1683_v40 = vld [vmem:[%s2072_s7 + $0x20] sm:$0xff]   ;;  %v1684_v41 = vld [vmem:[%s2072_s7 + $0x28] sm:$0xff]  }
  0x19   : > { %v1685_v42 = vld [vmem:[%s2072_s7 + $0x30] sm:$0xff]   ;;  %v1060_v43 = vld [vmem:[%s2073_s8] sm:$0x3] }
  0x1a   : > { %593 = vmatpush1.bf16.msra.mxu0 %v1628_v10  ;;  %v1676_v10 = vld [vmem:[%s2071_s6 + $0x28] sm:$0xff]  }
  0x1b   : > { %594 = vmatprep.subr.bf16.mxu0 %v1633_v11  ;;  %1469 = vmatpush3.bf16.msra.mxu1 %v1656_v27 }
  0x1c   : > { %1470 = vmatprep.subr.bf16.mxu1 %v1657_v28 }
  0x1e   : > { %595 = vmatpush1.bf16.msra.mxu0 %v1631_v17 }
  0x1f   : > { %596 = vmatprep.subr.bf16.mxu0 %v1636_v18  ;;  %1471 = vmatpush3.bf16.msra.mxu1 %v1658_v33 }
  0x20   : > { %1472 = vmatprep.subr.bf16.mxu1 %v1659_v34  ;;  %v1679_v34 = vld [vmem:[%s2072_s7] sm:$0xff]  }
  0x22   : > { %597 = vmatpush1.bf16.msra.mxu0 %v1634_v19 }
  0x23   : > { %598 = vmatprep.subr.bf16.mxu0 %v1639_v21  ;;  %1473 = vmatpush3.bf16.msra.mxu1 %v1660_v35 }
  0x24   : > { %1474 = vmatprep.subr.bf16.mxu1 %v1661_v36  ;;  %v1680_v36 = vld [vmem:[%s2072_s7 + $0x8] sm:$0xff]  }
  0x26   : > { %599 = vmatpush1.bf16.msra.mxu0 %v1637_v25  ;;  %v842_v25 = vld [vmem:[%s2075_s10 + $0x2] ss:$0 sm:$0xff] }
  0x27   : > { %600 = vmatprep.subr.bf16.mxu0 %v1642_v26  ;;  %1475 = vmatpush3.bf16.msra.mxu1 %v1662_v37  ;;  %v1681_v37 = vld [vmem:[%s2072_s7 + $0x10] sm:$0xff]  }
  0x28   : > { %1520 = vmatprep.subr.bf16.mxu1 %v1708_v38 }
  0x2a   : > { %601 = vmatpush1.bf16.msra.mxu0 %v1640_v29 }
  0x2b   : > { %602 = vmatprep.subr.bf16.mxu0 %v1645_v30 }
  0x2e   : > { %603 = vmatpush1.bf16.msra.mxu0 %v1643_v31 }
  0x2f   : > { %1540 = vmatprep.subr.bf16.mxu0 %v1708_v38 }
  0x31   : > { %621 = vmatmul.mubr.bf16.vlgmr.msra.gmra.mrb[0].mxu0 %v1646_v32 }
  0x32   : > { %1556 = vmatprep.mubr.msk.bf16.mxu0 %vm1709_vm2, %v1708_v38  ;;  %1541 = vmatpush3.bf16.msra.mxu0 %v1671_v4  ;;  %v1194_v4 = vld [vmem:[%s2075_s10 + $0x4] ss:$0 sm:$0xff] }
  0x33   : > { %1542 = vmatprep.subr.bf16.mxu0 %v1708_v38 }
  0x36   : > { %1543 = vmatpush3.bf16.msra.mxu0 %v1672_v5 }
  0x37   : > { %1544 = vmatprep.subr.bf16.mxu0 %v1708_v38 }
  0x3a   : > { %1545 = vmatpush3.bf16.msra.mxu0 %v1673_v6 }
  0x3b   : > { %1546 = vmatprep.subr.bf16.mxu0 %v1708_v38 }
  0x3e   : > { %1547 = vmatpush3.bf16.msra.mxu0 %v1674_v8 }
  0x3f   : > { %1548 = vmatprep.subr.bf16.mxu0 %v1708_v38 }
  0x42   : > { %1549 = vmatpush3.bf16.msra.mxu0 %v1675_v9 }
  0x43   : > { %1550 = vmatprep.subr.bf16.mxu0 %v1708_v38 }
  0x46   : > { %1551 = vmatpush3.bf16.msra.mxu0 %v1676_v10 }
  0x47   : > { %1552 = vmatprep.subr.bf16.mxu0 %v1708_v38 }
  0x4a   : > { %1553 = vmatpush3.bf16.msra.mxu0 %v1677_v23 }
  0x4b   : > { %1554 = vmatprep.subr.bf16.mxu0 %v1708_v38 }
  0x4e   : > { %1555 = vmatpush3.bf16.msra.mxu0 %v1678_v24 }
  0x4f   : > { %1566 = vmatprep.subr.bf16.mxu0 %v1708_v38 }
 0x104   : > { %v622_v46 = vpop.f32.mrb[0].mxu0 }
 0x105   : > { %v643_v47 = vadd.f32 %v636_v44, %v622_v46  ;;  %v624_v48 = vpop.f32.mrb[1].mxu0  ;;  %v1687_v46 = vld [vmem:[%s2074_s9] sm:$0xff]  }
 0x106   : > { %v644_v49 = vadd.f32 %v640_v45, %v624_v48  ;;  %v626_v50 = vpop.f32.mrb[2].mxu0  ;;  %v951_v48 = vld [vmem:[%s2075_s10 + $0x3] ss:$0 sm:$0xff] }
 0x107   : > { %v645_v51 = vadd.f32 %v636_v44, %v626_v50  ;;  %v628_v52 = vpop.f32.mrb[3].mxu0  ;;  %v647_v54 = vmax.f32 %v643_v47, 0.0  ;;  %v1062_v44 = vsel %vm452_vm0, %v1060_v43, 0  ;;  %v1688_v47 = vld [vmem:[%s2074_s9 + $0x8] sm:$0xff]  }
 0x108   : > { %v646_v53 = vadd.f32 %v640_v45, %v628_v52  ;;  %v648_v56 = vmax.f32 %v644_v49, 0.0  ;;  %v1686_v45 = vld [vmem:[%s2072_s7 + $0x38] sm:$0xff]  }
 0x109   : > { %v649_v55 = vmax.f32 %v645_v51, 0.0 }
 0x10a   : > { %v650_v57 = vmax.f32 %v646_v53, 0.0 }
 0x10b   : > { %v651_v58 = vpack.c.bf16 %v649_v55, %v647_v54 }
 0x10c   : > { %v652_v59 = vpack.c.bf16 %v650_v57, %v648_v56 }
 0x10e   : > { %814 = vmatprep.mubr.bf16.mxu1 %v652_v59 }
 0x10f   : > { %815 = vmatmul.mubr.bf16.vlgmr.msra.gmra.mrb[0].mxu1 %v651_v58 }
 0x110   : > { %1521 = vmatpush3.bf16.msra.mxu1 %v1663_v60  ;;  %1536 = vmatprep.mubr.msk.bf16.mxu1 %vm1709_vm2, %v1708_v38 }
 0x111   : > { %1522 = vmatprep.subr.bf16.mxu1 %v1708_v38 }
 0x114   : > { %1523 = vmatpush3.bf16.msra.mxu1 %v1664_v61  ;;  %v1690_v61 = vld [vmem:[%s2074_s9 + $0x18] sm:$0xff]  }
 0x115   : > { %1524 = vmatprep.subr.bf16.mxu1 %v1708_v38 }
 0x118   : > { %1525 = vmatpush3.bf16.msra.mxu1 %v1665_v62 }
 0x119   : > { %1526 = vmatprep.subr.bf16.mxu1 %v1708_v38 }
 0x11c   : > { %1527 = vmatpush3.bf16.msra.mxu1 %v1666_v63  ;;  %v1691_v63 = vld [vmem:[%s2074_s9 + $0x20] sm:$0xff]  }
 0x11d   : > { %1528 = vmatprep.subr.bf16.mxu1 %v1708_v38 }
 0x120   : > { %1529 = vmatpush3.bf16.msra.mxu1 %v1667_v0  ;;  %v1692_v0 = vld [vmem:[%s2074_s9 + $0x28] sm:$0xff]  }
 0x121   : > { %1530 = vmatprep.subr.bf16.mxu1 %v1708_v38 }
 0x124   : > { %1531 = vmatpush3.bf16.msra.mxu1 %v1668_v1  ;;  %v1693_v1 = vld [vmem:[%s2074_s9 + $0x30] sm:$0xff]  }
 0x125   : > { %1532 = vmatprep.subr.bf16.mxu1 %v1708_v38 }
 0x128   : > { %1533 = vmatpush3.bf16.msra.mxu1 %v1669_v2  ;;  %v1694_v2 = vld [vmem:[%s2074_s9 + $0x38] sm:$0xff]  }
 0x129   : > { %1534 = vmatprep.subr.bf16.mxu1 %v1708_v38 }
 0x12c   : > { %1535 = vmatpush3.bf16.msra.mxu1 %v1670_v3 }
 0x12d   : > { %1560 = vmatprep.subr.bf16.mxu1 %v1708_v38 }
 0x1e2   : > { %v1476_v11 = vpop.f32.mrb[0].mxu1 }
 0x1e3   : > { %v1477_v13 = vpop.f32.mrb[1].mxu1 }
 0x1e4   : > { %v1478_v14 = vadd.f32 %v1477_v13, %v1476_v11  ;;  %v1479_v15 = vpop.f32.mrb[2].mxu1 }
 0x1e5   : > { %v1480_v16 = vpop.f32.mrb[3].mxu1 }
 0x1e6   : > { %v817_v17 = vadd.f32 %v1478_v14, %v685_v12  ;;  %v1481_v18 = vadd.f32 %v1480_v16, %v1479_v15 }
 0x1e8   : > { %v820_v19 = vadd.f32 %v1481_v18, %v685_v12  ;;  %v823_v20 = vmax.f32 %v817_v17, 0.0 }
 0x1ea   : > { %v824_v21 = vmax.f32 %v820_v19, 0.0 }
 0x1ec   : > { %v825_v22 = vpack.c.bf16 %v824_v21, %v823_v20 }
 0x1ee   : > { %1537 = vmatmul.mubr.bf16.vlgmr.msra.gmra.mrb[4].mxu1 %v825_v22 }
 0x1ef   : > { %1562 = vmatprep.mubr.msk.bf16.mxu1 %vm1709_vm2, %v1708_v38  ;;  %1561 = vmatpush3.bf16.msra.mxu1 %v1062_v44 }
 0x1f0   : > { %1586 = vmatprep.subr.bf16.mxu1 %v1708_v38 }
 0x1f6   : > { %1563 = vmatmul.mubr.msk.bf16.vlgmr.msra.gmra.mrb[8].mxu1 %vm448_vm1, %v1798_v7  ;;  %v1689_v7 = vld [vmem:[%s2074_s9 + $0x10] sm:$0xff]  }
 0x1f7   : > { %1602 = vmatprep.mubr.msk.bf16.mxu1 %vm1709_vm2, %v1708_v38  ;;  %1587 = vmatpush3.bf16.msra.mxu1 %v1687_v46 }
 0x1f8   : > { %1588 = vmatprep.subr.bf16.mxu1 %v1708_v38 }
 0x1fb   : > { %1589 = vmatpush3.bf16.msra.mxu1 %v1688_v47 }
 0x1fc   : > { %1590 = vmatprep.subr.bf16.mxu1 %v1708_v38 }
 0x1ff   : > { %1591 = vmatpush3.bf16.msra.mxu1 %v1689_v7 }
 0x200   : > { %1592 = vmatprep.subr.bf16.mxu1 %v1708_v38 }
 0x203   : > { %1593 = vmatpush3.bf16.msra.mxu1 %v1690_v61 }
 0x204   : > { %1594 = vmatprep.subr.bf16.mxu1 %v1708_v38 }
 0x207   : > { %1595 = vmatpush3.bf16.msra.mxu1 %v1691_v63 }
 0x208   : > { %1596 = vmatprep.subr.bf16.mxu1 %v1708_v38 }
 0x20b   : > { %1597 = vmatpush3.bf16.msra.mxu1 %v1692_v0 }
 0x20c   : > { %1598 = vmatprep.subr.bf16.mxu1 %v1708_v38 }
 0x20f   : > { %1599 = vmatpush3.bf16.msra.mxu1 %v1693_v1 }
 0x210   : > { %1600 = vmatprep.subr.bf16.mxu1 %v1708_v38 }
 0x213   : > { %1601 = vmatpush3.bf16.msra.mxu1 %v1694_v2 }
 0x2c1   : > { %v925_v26 = vpop.f32.mrb[4].mxu1 }
 0x2c2   : > { %v926_v27 = vadd.f32 %v925_v26, %v842_v25  ;;  %v1538_v28 = vpop.f32.mrb[5].mxu1 }
 0x2c3   : > { %v928_v29 = vpop.f32.mrb[6].mxu1 }
 0x2c4   : > { %v929_v30 = vadd.f32 %v928_v29, %v842_v25  ;;  %v1539_v31 = vpop.f32.mrb[7].mxu1  ;;  %v932_v32 = vmax.f32 %v926_v27, 0.0 }
 0x2c6   : > { %v933_v33 = vmax.f32 %v929_v30, 0.0 }
 0x2c8   : > { %v934_v35 = vpack.c.bf16 %v933_v33, %v932_v32 }
 0x2c9   : > { %v1098_v58 = vpop.f32.mrb[8].mxu1 }
 0x2ca   : > { %1557 = vmatmul.mubr.bf16.vlgmr.msra.gmra.mrb[4].mxu0 %v934_v35  ;;  %v1564_v59 = vpop.f32.mrb[9].mxu1 }
 0x2cb   : > { %1567 = vmatpush3.bf16.msra.mxu0 %v1679_v34  ;;  %1582 = vmatprep.mubr.msk.bf16.mxu0 %vm1709_vm2, %v1708_v38  ;;  %v1101_v60 = vpop.f32.mrb[10].mxu1 }
 0x2cc   : > { %1568 = vmatprep.subr.bf16.mxu0 %v1708_v38  ;;  %v1565_v62 = vpop.f32.mrb[11].mxu1 }
 0x2cf   : > { %1569 = vmatpush3.bf16.msra.mxu0 %v1680_v36 }
 0x2d0   : > { %1570 = vmatprep.subr.bf16.mxu0 %v1708_v38 }
 0x2d3   : > { %1571 = vmatpush3.bf16.msra.mxu0 %v1681_v37 }
 0x2d4   : > { %1572 = vmatprep.subr.bf16.mxu0 %v1708_v38 }
 0x2d7   : > { %1573 = vmatpush3.bf16.msra.mxu0 %v1682_v39 }
 0x2d8   : > { %1574 = vmatprep.subr.bf16.mxu0 %v1708_v38 }
 0x2db   : > { %1575 = vmatpush3.bf16.msra.mxu0 %v1683_v40 }
 0x2dc   : > { %1576 = vmatprep.subr.bf16.mxu0 %v1708_v38 }
 0x2df   : > { %1577 = vmatpush3.bf16.msra.mxu0 %v1684_v41 }
 0x2e0   : > { %1578 = vmatprep.subr.bf16.mxu0 %v1708_v38 }
 0x2e3   : > { %1579 = vmatpush3.bf16.msra.mxu0 %v1685_v42 }
 0x2e4   : > { %1580 = vmatprep.subr.bf16.mxu0 %v1708_v38  ;;  %v1216_v38 = vld [vmem:[%s2075_s10 + $0x5] ss:$0 sm:$0xff] }
 0x2e7   : > { %1581 = vmatpush3.bf16.msra.mxu0 %v1686_v45 }
 0x39d   : > { %v1034_v49 = vpop.f32.mrb[4].mxu0 }
 0x39e   : > { %v1035_v50 = vadd.f32 %v1034_v49, %v951_v48  ;;  %v1558_v51 = vpop.f32.mrb[5].mxu0 }
 0x39f   : > { %v1037_v52 = vpop.f32.mrb[6].mxu0 }
 0x3a0   : > { %v1038_v53 = vadd.f32 %v1037_v52, %v951_v48  ;;  %v1559_v54 = vpop.f32.mrb[7].mxu0  ;;  %v1041_v55 = vmax.f32 %v1035_v50, 0.0 }
 0x3a2   : > { %v1042_v56 = vmax.f32 %v1038_v53, 0.0 }
 0x3a4   : > { %v1043_v57 = vpack.c.bf16 %v1042_v56, %v1041_v55 }
 0x3a6   : > { %1583 = vmatmul.mubr.bf16.vlgmr.msra.gmra.mrb[8].mxu0 %v1043_v57 }
 0x479   : > { %v1187_v3 = vpop.f32.mrb[8].mxu0 }
 0x47a   : > { %v1188_v5 = vadd.f32 %v1187_v3, %v1098_v58  ;;  %v1584_v6 = vpop.f32.mrb[9].mxu0 }
 0x47b   : > { %v1190_v8 = vpop.f32.mrb[10].mxu0 }
 0x47c   : > { %v1195_v9 = vadd.f32 %v1194_v4, %v1188_v5  ;;  %v1191_v10 = vadd.f32 %v1190_v8, %v1101_v60  ;;  %v1585_v11 = vpop.f32.mrb[11].mxu0 }
 0x47e   : > { %v1196_v12 = vadd.f32 %v1194_v4, %v1191_v10  ;;  %1695 = vtanh.f32 %v1195_v9 }
 0x480   : > { %1697 = vtanh.f32 %v1196_v12 }
 0x488   : > { %v1696_v13 = vpop.eup %1695 }
 0x48a   : > { %v1698_v14 = vpop.eup %1697 }
 0x48b   : > { %v1199_v15 = vpack.c.bf16 %v1698_v14, %v1696_v13 }
 0x48d   : > { %1603 = vmatmul.mubr.bf16.vlgmr.msra.gmra.mrb[12].mxu1 %v1199_v15 }
 0x560   : > { %v1299_v16 = vpop.f32.mrb[12].mxu1 }
 0x561   : > { %v1300_v17 = vadd.f32 %v1299_v16, %v1216_v38  ;;  %v1604_v18 = vpop.f32.mrb[13].mxu1 }
 0x562   : > { %v1302_v19 = vpop.f32.mrb[14].mxu1 }
 0x563   : > { %1307 = vst.msk [vmem:[%s410_s25] sm:$0xff] %vm1306_vm3, %v1300_v17  ;;  %v1303_v20 = vadd.f32 %v1302_v19, %v1216_v38  ;;  %v1605_v21 = vpop.f32.mrb[15].mxu1 }
 0x565   : > { %1308 = vst.msk [vmem:[%s410_s25 + $0x8] sm:$0xff] %vm1306_vm3, %v1303_v20 }
 0x566 PF: > { %s21_s17 = sadd.s32 1, %s1705_s17  }
 0x567   : > { %p18_p4 = scmp.ge.s32.totalorder %s21_s17, 4  }
 0x569   :  { %20 = sbr.rel (!%p18_p4) target bundleno = 1 (0x1), region = 97 }

</bundles_post_ra>
